<compile_context>
chip_gen: v5e
topology: v5e:2x2
jax: 0.10.0
libtpu: 0.0.40
codegen_flags: <defaults>
</compile_context>

<pallas_src>
import jax
import jax.numpy as jnp
from jax import lax
from jax.experimental import pallas as pl
from jax.experimental.pallas import tpu as pltpu


# ----------------------------- Pallas kernel -------------------------------

def up_doubleconv_kernel(x2_ref, x1_ref, w1a_ref, w1b_ref, s1_ref, t1_ref,
                         w2_ref, s2_ref, t2_ref, o_ref, hp_ref):
    # x2_ref, x1_ref : (H+2, (W+2)*C)   pre-padded, lane-merged inputs
    # w1a/w1b/w2_ref : (3, K, N)        banded weights, one slab per row tap
    # s*_ref, t*_ref : (1, W*C)         folded BN scale / bias (tiled over W)
    # o_ref          : (H, W*Cout)      lane-dense output slab
    # hp_ref         : (H+2, W*Cmid)    scratch: row-padded intermediate h
    H = o_ref.shape[0]
    wcm = s1_ref.shape[-1]           # W * Cmid
    wco = s2_ref.shape[-1]           # W * Cout

    # ---- conv1 + BN + ReLU (skip-connection concat fused via split weights)
    acc1 = jnp.zeros((H, wcm), jnp.float32)
    for dy in range(3):
        acc1 = acc1 + jnp.dot(x2_ref[dy:dy + H, :], w1a_ref[dy],
                              preferred_element_type=jnp.float32)
        acc1 = acc1 + jnp.dot(x1_ref[dy:dy + H, :], w1b_ref[dy],
                              preferred_element_type=jnp.float32)
    h = jnp.maximum(acc1 * s1_ref[...] + t1_ref[...], 0.0)

    # ---- row (H) halo for conv2; W halo is folded into the band structure.
    # Border rows are re-zeroed every grid step so a parallel/megacore split
    # of the grid stays correct even though the scratch persists.
    hp_ref[0:1, :] = jnp.zeros((1, wcm), jnp.float32)
    hp_ref[H + 1:H + 2, :] = jnp.zeros((1, wcm), jnp.float32)
    hp_ref[1:H + 1, :] = h

    # ---- conv2 + BN + ReLU
    acc2 = jnp.zeros((H, wco), jnp.float32)
    for dy in range(3):
        acc2 = acc2 + jnp.dot(hp_ref[dy:dy + H, :], w2_ref[dy],
                              preferred_element_type=jnp.float32)
    o_ref[...] = jnp.maximum(acc2 * s2_ref[...] + t2_ref[...], 0.0
                             ).astype(o_ref.dtype)


# --------------------------- banded conv weights ----------------------------

def _band_weights(w_hwio, w_out, pad_in):
    """Turn a (3,3,Ci,Co) kernel into 3 banded matrices (one per row tap).

    B[dy][(xp*Ci + ci), (x*Co + co)] = w[dy, dx, ci, co] with dx = xp - x
    (padded input, pad_in=1) or dx = xp - x + 1 (unpadded input, pad_in=0),
    zero outside the 3-tap band.  Zero-padding along W is therefore implicit.
    """
    kh, kw, ci, co = w_hwio.shape
    w_in = w_out + 2 * pad_in
    xp = jnp.arange(w_in)[:, None]
    x = jnp.arange(w_out)[None, :]
    dx = xp - x + (1 - pad_in)
    valid = (dx >= 0) & (dx < kw)
    dx_c = jnp.clip(dx, 0, kw - 1)
    mats = []
    for dy in range(kh):
        wt = w_hwio[dy][dx_c]                                  # (w_in, w_out, ci, co)
        wt = jnp.where(valid[:, :, None, None], wt, 0.0)
        mats.append(jnp.transpose(wt, (0, 2, 1, 3)).reshape(w_in * ci, w_out * co))
    return jnp.stack(mats, axis=0)                             # (3, w_in*ci, w_out*co)


# --------------------------------- glue ------------------------------------

def bilinear_upsample_align_corners(x, out_h, out_w):
    """nn.Upsample(scale_factor=2, mode='bilinear', align_corners=True) on NCHW."""
    B, C, H, W = x.shape

    def coords(out_size, in_size):
        if out_size == 1 or in_size == 1:
            src = jnp.zeros((out_size,), jnp.float32)
        else:
            src = jnp.arange(out_size, dtype=jnp.float32) * (
                (in_size - 1) / (out_size - 1))
        i0 = jnp.clip(jnp.floor(src).astype(jnp.int32), 0, in_size - 1)
        i1 = jnp.minimum(i0 + 1, in_size - 1)
        frac = src - i0.astype(jnp.float32)
        return i0, i1, frac

    y0, y1, wy = coords(out_h, H)
    x0, x1, wx = coords(out_w, W)
    rows0 = x[:, :, y0, :]
    rows1 = x[:, :, y1, :]
    tl = rows0[:, :, :, x0]
    tr = rows0[:, :, :, x1]
    bl = rows1[:, :, :, x0]
    br = rows1[:, :, :, x1]
    wx_ = wx[None, None, None, :]
    wy_ = wy[None, None, :, None]
    top = tl * (1.0 - wx_) + tr * wx_
    bot = bl * (1.0 - wx_) + br * wx_
    return top * (1.0 - wy_) + bot * wy_


def up_forward(params, x1, x2):
    """Up.forward(x1, x2): upsample x1, pad to x2, concat [x2, x1], DoubleConv."""
    x1 = x1.astype(jnp.float32)
    x2 = x2.astype(jnp.float32)
    B, c1, hh, ww = x1.shape
    _, c2, H, W = x2.shape

    # --- upsample + F.pad(diff) + conv 1-px halo pad (all folded into one pad)
    x1u = bilinear_upsample_align_corners(x1, 2 * hh, 2 * ww)        # NCHW
    dy_ = H - x1u.shape[2]
    dx_ = W - x1u.shape[3]
    x1n = jnp.transpose(x1u, (0, 2, 3, 1))                           # NHWC
    x2n = jnp.transpose(x2, (0, 2, 3, 1))
    x1p = jnp.pad(x1n, ((0, 0),
                        (1 + dy_ // 2, 1 + dy_ - dy_ // 2),
                        (1 + dx_ // 2, 1 + dx_ - dx_ // 2),
                        (0, 0)))
    x2p = jnp.pad(x2n, ((0, 0), (1, 1), (1, 1), (0, 0)))
    Wp = W + 2
    # lane-merge (x, c) so the kernel sees lane-dense 2-D slabs per image
    x1m = x1p.reshape(B, H + 2, Wp * c1)
    x2m = x2p.reshape(B, H + 2, Wp * c2)

    w1 = params['w1']                    # (3,3,Cin,Cmid) HWIO, Cin = c2 + c1
    w2 = params['w2']                    # (3,3,Cmid,Cout) HWIO
    cm = w1.shape[-1]
    co = w2.shape[-1]
    # channel concat [x2, x1] fused into the kernel: split w1 along in-channels
    b1a = _band_weights(w1[:, :, :c2, :], W, pad_in=1)   # (3, Wp*c2, W*cm)
    b1b = _band_weights(w1[:, :, c2:, :], W, pad_in=1)   # (3, Wp*c1, W*cm)
    b2w = _band_weights(w2, W, pad_in=0)                 # (3, W*cm,  W*co)
    s1t = jnp.tile(params['s1'], W).reshape(1, W * cm)
    t1t = jnp.tile(params['b1'], W).reshape(1, W * cm)
    s2t = jnp.tile(params['s2'], W).reshape(1, W * co)
    t2t = jnp.tile(params['b2'], W).reshape(1, W * co)

    flops = 2 * B * 3 * H * (Wp * (c1 + c2) * W * cm + W * cm * W * co)
    bytes_acc = 4 * (x1m.size + x2m.size + b1a.size + b1b.size + b2w.size
                     + 2 * W * (cm + co) + B * H * W * co)

    out = pl.pallas_call(
        up_doubleconv_kernel,
        out_shape=jax.ShapeDtypeStruct((B, H, W * co), jnp.float32),
        grid=(B,),
        in_specs=[
            pl.BlockSpec((None, H + 2, Wp * c2), lambda b: (b, 0, 0)),
            pl.BlockSpec((None, H + 2, Wp * c1), lambda b: (b, 0, 0)),
            pl.BlockSpec((3, Wp * c2, W * cm), lambda b: (0, 0, 0)),
            pl.BlockSpec((3, Wp * c1, W * cm), lambda b: (0, 0, 0)),
            pl.BlockSpec((1, W * cm), lambda b: (0, 0)),
            pl.BlockSpec((1, W * cm), lambda b: (0, 0)),
            pl.BlockSpec((3, W * cm, W * co), lambda b: (0, 0, 0)),
            pl.BlockSpec((1, W * co), lambda b: (0, 0)),
            pl.BlockSpec((1, W * co), lambda b: (0, 0)),
        ],
        out_specs=pl.BlockSpec((None, H, W * co), lambda b: (b, 0, 0)),
        scratch_shapes=[pltpu.VMEM((H + 2, W * cm), jnp.float32)],
        compiler_params=pltpu.CompilerParams(
            dimension_semantics=("parallel",),
            vmem_limit_bytes=32 * 1024 * 1024),
        cost_estimate=pl.CostEstimate(flops=flops, transcendentals=0,
                                      bytes_accessed=bytes_acc),
    )(x2m, x1m, b1a, b1b, s1t, t1t, b2w, s2t, t2t)

    out = out.reshape(B, H, W, co)
    # back to NCHW only because the module's external interface is NCHW.
    return jnp.transpose(out, (0, 3, 1, 2))


def init_params(key, in_channels, out_channels):
    """Deterministic synthetic params for DoubleConv(in, out, mid=in//2)."""
    mid = in_channels // 2
    ks = jax.random.split(key, 8)
    w1_oihw = 0.1 * jax.random.normal(ks[0], (mid, in_channels, 3, 3), jnp.float32)
    w2_oihw = 0.1 * jax.random.normal(ks[1], (out_channels, mid, 3, 3), jnp.float32)
    gamma1 = 1.0 + 0.1 * jax.random.normal(ks[2], (mid,), jnp.float32)
    beta1 = 0.1 * jax.random.normal(ks[3], (mid,), jnp.float32)
    mean1 = 0.1 * jax.random.normal(ks[4], (mid,), jnp.float32)
    var1 = 1.0 + 0.1 * jnp.abs(jax.random.normal(ks[5], (mid,), jnp.float32))
    gamma2 = 1.0 + 0.1 * jax.random.normal(ks[6], (out_channels,), jnp.float32)
    beta2 = 0.1 * jax.random.normal(ks[7], (out_channels,), jnp.float32)
    mean2 = jnp.zeros((out_channels,), jnp.float32)
    var2 = jnp.ones((out_channels,), jnp.float32)
    eps = 1e-5
    s1 = gamma1 / jnp.sqrt(var1 + eps)
    b1 = beta1 - mean1 * s1
    s2 = gamma2 / jnp.sqrt(var2 + eps)
    b2 = beta2 - mean2 * s2
    return dict(
        w1=jnp.transpose(w1_oihw, (2, 3, 1, 0)),  # OIHW -> HWIO for the kernel
        w2=jnp.transpose(w2_oihw, (2, 3, 1, 0)),
        w1_oihw=w1_oihw, w2_oihw=w2_oihw,
        s1=s1, b1=b1, s2=s2, b2=b2)


def double_conv_ref(x_nchw, w1_oihw, s1, b1, w2_oihw, s2, b2):
    """Pure-JAX reference for the DoubleConv hot path."""
    dn = ('NCHW', 'OIHW', 'NCHW')
    y = lax.conv_general_dilated(x_nchw, w1_oihw, (1, 1), 'SAME',
                                 dimension_numbers=dn,
                                 precision=lax.Precision.HIGHEST)
    y = jnp.maximum(y * s1.reshape(1, -1, 1, 1) + b1.reshape(1, -1, 1, 1), 0.0)
    y = lax.conv_general_dilated(y, w2_oihw, (1, 1), 'SAME',
                                 dimension_numbers=dn,
                                 precision=lax.Precision.HIGHEST)
    return jnp.maximum(y * s2.reshape(1, -1, 1, 1) + b2.reshape(1, -1, 1, 1), 0.0)


if __name__ == "__main__":
    key = jax.random.PRNGKey(0)
    k1, k2, kp = jax.random.split(key, 3)

    # Up(in_channels=8, out_channels=4, bilinear=True)
    in_channels, out_channels = 8, 4
    B = 2
    # x1: deeper feature map (half spatial size), x2: skip connection.
    x1 = jax.random.normal(k1, (B, in_channels // 2, 8, 8), jnp.float32)
    x2 = jax.random.normal(k2, (B, in_channels // 2, 16, 16), jnp.float32)
    params = init_params(kp, in_channels, out_channels)

    up_fn = jax.jit(up_forward)
    out = up_fn(params, x1, x2)
    out = jax.block_until_ready(out)

    # correctness check against a pure-JAX reference
    x1u = bilinear_upsample_align_corners(x1, 16, 16)
    xcat = jnp.concatenate([x2, x1u], axis=1)
    ref = double_conv_ref(xcat, params['w1_oihw'], params['s1'], params['b1'],
                          params['w2_oihw'], params['s2'], params['b2'])
    assert out.shape == (B, out_channels, 16, 16), out.shape
    max_err = float(jnp.max(jnp.abs(out - ref)))
    assert jnp.allclose(out, ref, rtol=1e-3, atol=1e-3), max_err
    print("KERNEL_OK")
</pallas_src>

<mosaic_0001>
module attributes {stable_mosaic.version = 11 : i64} {
  func.func @up_doubleconv_kernel(%arg0: i32, %arg1: memref<1x18x72xf32, #tpu.memory_space<vmem>>, %arg2: memref<1x18x72xf32, #tpu.memory_space<vmem>>, %arg3: memref<3x72x64xf32, #tpu.memory_space<vmem>>, %arg4: memref<3x72x64xf32, #tpu.memory_space<vmem>>, %arg5: memref<1x64xf32, #tpu.memory_space<vmem>>, %arg6: memref<1x64xf32, #tpu.memory_space<vmem>>, %arg7: memref<3x64x64xf32, #tpu.memory_space<vmem>>, %arg8: memref<1x64xf32, #tpu.memory_space<vmem>>, %arg9: memref<1x64xf32, #tpu.memory_space<vmem>>, %arg10: memref<1x16x64xf32, #tpu.memory_space<vmem>>, %arg11: memref<18x64xf32, #tpu.memory_space<vmem>>) attributes {dimension_semantics = [#tpu.dimension_semantics<parallel>], iteration_bounds = array<i64: 2>, scalar_prefetch = 0 : i64, scratch_operands = 1 : i64, tpu.core_type = #tpu.core_type<tc>, window_params = [{transform_indices = @transform_0, window_bounds = array<i64: 1, 18, 72>}, {transform_indices = @transform_1, window_bounds = array<i64: 1, 18, 72>}, {pipeline_mode = #tpu.pipeline_mode<synchronous>, transform_indices = @transform_2, window_bounds = array<i64: 3, 72, 64>}, {pipeline_mode = #tpu.pipeline_mode<synchronous>, transform_indices = @transform_3, window_bounds = array<i64: 3, 72, 64>}, {pipeline_mode = #tpu.pipeline_mode<synchronous>, transform_indices = @transform_4, window_bounds = array<i64: 1, 64>}, {pipeline_mode = #tpu.pipeline_mode<synchronous>, transform_indices = @transform_5, window_bounds = array<i64: 1, 64>}, {pipeline_mode = #tpu.pipeline_mode<synchronous>, transform_indices = @transform_6, window_bounds = array<i64: 3, 64, 64>}, {pipeline_mode = #tpu.pipeline_mode<synchronous>, transform_indices = @transform_7, window_bounds = array<i64: 1, 64>}, {pipeline_mode = #tpu.pipeline_mode<synchronous>, transform_indices = @transform_8, window_bounds = array<i64: 1, 64>}, {transform_indices = @transform_9, window_bounds = array<i64: 1, 16, 64>}]} {
    %cst = arith.constant 0.000000e+00 : f32
    %0 = vector.broadcast %cst : f32 to vector<16x64xf32>
    %c0 = arith.constant 0 : index
    %c0_0 = arith.constant 0 : index
    %c0_1 = arith.constant 0 : index
    %1 = vector.load %arg1[%c0, %c0_0, %c0_1] : memref<1x18x72xf32, #tpu.memory_space<vmem>>, vector<1x16x72xf32>
    %2 = vector.shape_cast %1 : vector<1x16x72xf32> to vector<16x72xf32>
    %c0_2 = arith.constant 0 : index
    %c0_3 = arith.constant 0 : index
    %c0_4 = arith.constant 0 : index
    %3 = vector.load %arg3[%c0_2, %c0_3, %c0_4] : memref<3x72x64xf32, #tpu.memory_space<vmem>>, vector<1x72x64xf32>
    %4 = vector.shape_cast %3 : vector<1x72x64xf32> to vector<72x64xf32>
    %cst_5 = arith.constant dense<0.000000e+00> : vector<16x64xf32>
    %5 = tpu.matmul %2, %4, %cst_5 {dimension_numbers = #tpu.dot_dimension_numbers<[1], [0], [0], [1], [0, 0, 1, 1], [], []>} : vector<16x72xf32>, vector<72x64xf32>, vector<16x64xf32> -> vector<16x64xf32>
    %6 = arith.addf %0, %5 : vector<16x64xf32>
    %c0_6 = arith.constant 0 : index
    %c0_7 = arith.constant 0 : index
    %c0_8 = arith.constant 0 : index
    %7 = vector.load %arg2[%c0_6, %c0_7, %c0_8] : memref<1x18x72xf32, #tpu.memory_space<vmem>>, vector<1x16x72xf32>
    %8 = vector.shape_cast %7 : vector<1x16x72xf32> to vector<16x72xf32>
    %c0_9 = arith.constant 0 : index
    %c0_10 = arith.constant 0 : index
    %c0_11 = arith.constant 0 : index
    %9 = vector.load %arg4[%c0_9, %c0_10, %c0_11] : memref<3x72x64xf32, #tpu.memory_space<vmem>>, vector<1x72x64xf32>
    %10 = vector.shape_cast %9 : vector<1x72x64xf32> to vector<72x64xf32>
    %cst_12 = arith.constant dense<0.000000e+00> : vector<16x64xf32>
    %11 = tpu.matmul %8, %10, %cst_12 {dimension_numbers = #tpu.dot_dimension_numbers<[1], [0], [0], [1], [0, 0, 1, 1], [], []>} : vector<16x72xf32>, vector<72x64xf32>, vector<16x64xf32> -> vector<16x64xf32>
    %12 = arith.addf %6, %11 : vector<16x64xf32>
    %c0_13 = arith.constant 0 : index
    %c1 = arith.constant 1 : index
    %c0_14 = arith.constant 0 : index
    %13 = vector.load %arg1[%c0_13, %c1, %c0_14] : memref<1x18x72xf32, #tpu.memory_space<vmem>>, vector<1x16x72xf32>
    %14 = vector.shape_cast %13 : vector<1x16x72xf32> to vector<16x72xf32>
    %c1_15 = arith.constant 1 : index
    %c0_16 = arith.constant 0 : index
    %c0_17 = arith.constant 0 : index
    %15 = vector.load %arg3[%c1_15, %c0_16, %c0_17] : memref<3x72x64xf32, #tpu.memory_space<vmem>>, vector<1x72x64xf32>
    %16 = vector.shape_cast %15 : vector<1x72x64xf32> to vector<72x64xf32>
    %cst_18 = arith.constant dense<0.000000e+00> : vector<16x64xf32>
    %17 = tpu.matmul %14, %16, %cst_18 {dimension_numbers = #tpu.dot_dimension_numbers<[1], [0], [0], [1], [0, 0, 1, 1], [], []>} : vector<16x72xf32>, vector<72x64xf32>, vector<16x64xf32> -> vector<16x64xf32>
    %18 = arith.addf %12, %17 : vector<16x64xf32>
    %c0_19 = arith.constant 0 : index
    %c1_20 = arith.constant 1 : index
    %c0_21 = arith.constant 0 : index
    %19 = vector.load %arg2[%c0_19, %c1_20, %c0_21] : memref<1x18x72xf32, #tpu.memory_space<vmem>>, vector<1x16x72xf32>
    %20 = vector.shape_cast %19 : vector<1x16x72xf32> to vector<16x72xf32>
    %c1_22 = arith.constant 1 : index
    %c0_23 = arith.constant 0 : index
    %c0_24 = arith.constant 0 : index
    %21 = vector.load %arg4[%c1_22, %c0_23, %c0_24] : memref<3x72x64xf32, #tpu.memory_space<vmem>>, vector<1x72x64xf32>
    %22 = vector.shape_cast %21 : vector<1x72x64xf32> to vector<72x64xf32>
    %cst_25 = arith.constant dense<0.000000e+00> : vector<16x64xf32>
    %23 = tpu.matmul %20, %22, %cst_25 {dimension_numbers = #tpu.dot_dimension_numbers<[1], [0], [0], [1], [0, 0, 1, 1], [], []>} : vector<16x72xf32>, vector<72x64xf32>, vector<16x64xf32> -> vector<16x64xf32>
    %24 = arith.addf %18, %23 : vector<16x64xf32>
    %c0_26 = arith.constant 0 : index
    %c2 = arith.constant 2 : index
    %c0_27 = arith.constant 0 : index
    %25 = vector.load %arg1[%c0_26, %c2, %c0_27] : memref<1x18x72xf32, #tpu.memory_space<vmem>>, vector<1x16x72xf32>
    %26 = vector.shape_cast %25 : vector<1x16x72xf32> to vector<16x72xf32>
    %c2_28 = arith.constant 2 : index
    %c0_29 = arith.constant 0 : index
    %c0_30 = arith.constant 0 : index
    %27 = vector.load %arg3[%c2_28, %c0_29, %c0_30] : memref<3x72x64xf32, #tpu.memory_space<vmem>>, vector<1x72x64xf32>
    %28 = vector.shape_cast %27 : vector<1x72x64xf32> to vector<72x64xf32>
    %cst_31 = arith.constant dense<0.000000e+00> : vector<16x64xf32>
    %29 = tpu.matmul %26, %28, %cst_31 {dimension_numbers = #tpu.dot_dimension_numbers<[1], [0], [0], [1], [0, 0, 1, 1], [], []>} : vector<16x72xf32>, vector<72x64xf32>, vector<16x64xf32> -> vector<16x64xf32>
    %30 = arith.addf %24, %29 : vector<16x64xf32>
    %c0_32 = arith.constant 0 : index
    %c2_33 = arith.constant 2 : index
    %c0_34 = arith.constant 0 : index
    %31 = vector.load %arg2[%c0_32, %c2_33, %c0_34] : memref<1x18x72xf32, #tpu.memory_space<vmem>>, vector<1x16x72xf32>
    %32 = vector.shape_cast %31 : vector<1x16x72xf32> to vector<16x72xf32>
    %c2_35 = arith.constant 2 : index
    %c0_36 = arith.constant 0 : index
    %c0_37 = arith.constant 0 : index
    %33 = vector.load %arg4[%c2_35, %c0_36, %c0_37] : memref<3x72x64xf32, #tpu.memory_space<vmem>>, vector<1x72x64xf32>
    %34 = vector.shape_cast %33 : vector<1x72x64xf32> to vector<72x64xf32>
    %cst_38 = arith.constant dense<0.000000e+00> : vector<16x64xf32>
    %35 = tpu.matmul %32, %34, %cst_38 {dimension_numbers = #tpu.dot_dimension_numbers<[1], [0], [0], [1], [0, 0, 1, 1], [], []>} : vector<16x72xf32>, vector<72x64xf32>, vector<16x64xf32> -> vector<16x64xf32>
    %36 = arith.addf %30, %35 : vector<16x64xf32>
    %c0_39 = arith.constant 0 : index
    %c0_40 = arith.constant 0 : index
    %37 = vector.load %arg5[%c0_39, %c0_40] : memref<1x64xf32, #tpu.memory_space<vmem>>, vector<1x64xf32>
    %38 = vector.broadcast %37 : vector<1x64xf32> to vector<16x64xf32>
    %39 = arith.mulf %36, %38 : vector<16x64xf32>
    %c0_41 = arith.constant 0 : index
    %c0_42 = arith.constant 0 : index
    %40 = vector.load %arg6[%c0_41, %c0_42] : memref<1x64xf32, #tpu.memory_space<vmem>>, vector<1x64xf32>
    %41 = vector.broadcast %40 : vector<1x64xf32> to vector<16x64xf32>
    %42 = arith.addf %39, %41 : vector<16x64xf32>
    %cst_43 = arith.constant 0.000000e+00 : f32
    %43 = vector.broadcast %cst_43 : f32 to vector<16x64xf32>
    %44 = arith.maximumf %42, %43 : vector<16x64xf32>
    %cst_44 = arith.constant 0.000000e+00 : f32
    %45 = vector.broadcast %cst_44 : f32 to vector<1x64xf32>
    %c0_45 = arith.constant 0 : index
    %c0_46 = arith.constant 0 : index
    %46 = vector.load %arg11[%c0_45, %c0_46] : memref<18x64xf32, #tpu.memory_space<vmem>>, vector<1x64xf32>
    tpu.vector_store %arg11[%c0_45, %c0_46], %45 {strides = array<i32>} : memref<18x64xf32, #tpu.memory_space<vmem>>, vector<1x64xf32>,
    %cst_47 = arith.constant 0.000000e+00 : f32
    %47 = vector.broadcast %cst_47 : f32 to vector<1x64xf32>
    %c17 = arith.constant 17 : index
    %c0_48 = arith.constant 0 : index
    %48 = vector.load %arg11[%c17, %c0_48] : memref<18x64xf32, #tpu.memory_space<vmem>>, vector<1x64xf32>
    tpu.vector_store %arg11[%c17, %c0_48], %47 {strides = array<i32>} : memref<18x64xf32, #tpu.memory_space<vmem>>, vector<1x64xf32>,
    %c1_49 = arith.constant 1 : index
    %c0_50 = arith.constant 0 : index
    %49 = vector.load %arg11[%c1_49, %c0_50] : memref<18x64xf32, #tpu.memory_space<vmem>>, vector<16x64xf32>
    tpu.vector_store %arg11[%c1_49, %c0_50], %44 {strides = array<i32>} : memref<18x64xf32, #tpu.memory_space<vmem>>, vector<16x64xf32>,
    %cst_51 = arith.constant 0.000000e+00 : f32
    %50 = vector.broadcast %cst_51 : f32 to vector<16x64xf32>
    %c0_52 = arith.constant 0 : index
    %c0_53 = arith.constant 0 : index
    %51 = vector.load %arg11[%c0_52, %c0_53] : memref<18x64xf32, #tpu.memory_space<vmem>>, vector<16x64xf32>
    %c0_54 = arith.constant 0 : index
    %c0_55 = arith.constant 0 : index
    %c0_56 = arith.constant 0 : index
    %52 = vector.load %arg7[%c0_54, %c0_55, %c0_56] : memref<3x64x64xf32, #tpu.memory_space<vmem>>, vector<1x64x64xf32>
    %53 = vector.shape_cast %52 : vector<1x64x64xf32> to vector<64x64xf32>
    %cst_57 = arith.constant dense<0.000000e+00> : vector<16x64xf32>
    %54 = tpu.matmul %51, %53, %cst_57 {dimension_numbers = #tpu.dot_dimension_numbers<[1], [0], [0], [1], [0, 0, 1, 1], [], []>} : vector<16x64xf32>, vector<64x64xf32>, vector<16x64xf32> -> vector<16x64xf32>
    %55 = arith.addf %50, %54 : vector<16x64xf32>
    %c1_58 = arith.constant 1 : index
    %c0_59 = arith.constant 0 : index
    %56 = vector.load %arg11[%c1_58, %c0_59] : memref<18x64xf32, #tpu.memory_space<vmem>>, vector<16x64xf32>
    %c1_60 = arith.constant 1 : index
    %c0_61 = arith.constant 0 : index
    %c0_62 = arith.constant 0 : index
    %57 = vector.load %arg7[%c1_60, %c0_61, %c0_62] : memref<3x64x64xf32, #tpu.memory_space<vmem>>, vector<1x64x64xf32>
    %58 = vector.shape_cast %57 : vector<1x64x64xf32> to vector<64x64xf32>
    %cst_63 = arith.constant dense<0.000000e+00> : vector<16x64xf32>
    %59 = tpu.matmul %56, %58, %cst_63 {dimension_numbers = #tpu.dot_dimension_numbers<[1], [0], [0], [1], [0, 0, 1, 1], [], []>} : vector<16x64xf32>, vector<64x64xf32>, vector<16x64xf32> -> vector<16x64xf32>
    %60 = arith.addf %55, %59 : vector<16x64xf32>
    %c2_64 = arith.constant 2 : index
    %c0_65 = arith.constant 0 : index
    %61 = vector.load %arg11[%c2_64, %c0_65] : memref<18x64xf32, #tpu.memory_space<vmem>>, vector<16x64xf32>
    %c2_66 = arith.constant 2 : index
    %c0_67 = arith.constant 0 : index
    %c0_68 = arith.constant 0 : index
    %62 = vector.load %arg7[%c2_66, %c0_67, %c0_68] : memref<3x64x64xf32, #tpu.memory_space<vmem>>, vector<1x64x64xf32>
    %63 = vector.shape_cast %62 : vector<1x64x64xf32> to vector<64x64xf32>
    %cst_69 = arith.constant dense<0.000000e+00> : vector<16x64xf32>
    %64 = tpu.matmul %61, %63, %cst_69 {dimension_numbers = #tpu.dot_dimension_numbers<[1], [0], [0], [1], [0, 0, 1, 1], [], []>} : vector<16x64xf32>, vector<64x64xf32>, vector<16x64xf32> -> vector<16x64xf32>
    %65 = arith.addf %60, %64 : vector<16x64xf32>
    %c0_70 = arith.constant 0 : index
    %c0_71 = arith.constant 0 : index
    %66 = vector.load %arg8[%c0_70, %c0_71] : memref<1x64xf32, #tpu.memory_space<vmem>>, vector<1x64xf32>
    %67 = vector.broadcast %66 : vector<1x64xf32> to vector<16x64xf32>
    %68 = arith.mulf %65, %67 : vector<16x64xf32>
    %c0_72 = arith.constant 0 : index
    %c0_73 = arith.constant 0 : index
    %69 = vector.load %arg9[%c0_72, %c0_73] : memref<1x64xf32, #tpu.memory_space<vmem>>, vector<1x64xf32>
    %70 = vector.broadcast %69 : vector<1x64xf32> to vector<16x64xf32>
    %71 = arith.addf %68, %70 : vector<16x64xf32>
    %cst_74 = arith.constant 0.000000e+00 : f32
    %72 = vector.broadcast %cst_74 : f32 to vector<16x64xf32>
    %73 = arith.maximumf %71, %72 : vector<16x64xf32>
    %c0_75 = arith.constant 0 : index
    %c0_76 = arith.constant 0 : index
    %c0_77 = arith.constant 0 : index
    %74 = vector.load %arg10[%c0_75, %c0_76, %c0_77] : memref<1x16x64xf32, #tpu.memory_space<vmem>>, vector<1x16x64xf32>
    %75 = vector.shape_cast %74 : vector<1x16x64xf32> to vector<16x64xf32>
    %76 = vector.shape_cast %73 : vector<16x64xf32> to vector<1x16x64xf32>
    tpu.vector_store %arg10[%c0_75, %c0_76, %c0_77], %76 {strides = array<i32>} : memref<1x16x64xf32, #tpu.memory_space<vmem>>, vector<1x16x64xf32>,
    return
  }
  func.func @transform_0(%arg0: i32) -> (i32, i32, i32) {
    %c0_i32 = arith.constant 0 : i32
    %c0_i32_0 = arith.constant 0 : i32
    %c0_i32_1 = arith.constant 0 : i32
    return %arg0, %c0_i32, %c0_i32_0 : i32, i32, i32
  }
  func.func @transform_1(%arg0: i32) -> (i32, i32, i32) {
    %c0_i32 = arith.constant 0 : i32
    %c0_i32_0 = arith.constant 0 : i32
    %c0_i32_1 = arith.constant 0 : i32
    return %arg0, %c0_i32, %c0_i32_0 : i32, i32, i32
  }
  func.func @transform_2(%arg0: i32) -> (i32, i32, i32) {
    %c0_i32 = arith.constant 0 : i32
    %c0_i32_0 = arith.constant 0 : i32
    %c0_i32_1 = arith.constant 0 : i32
    %c0_i32_2 = arith.constant 0 : i32
    return %c0_i32, %c0_i32_0, %c0_i32_1 : i32, i32, i32
  }
  func.func @transform_3(%arg0: i32) -> (i32, i32, i32) {
    %c0_i32 = arith.constant 0 : i32
    %c0_i32_0 = arith.constant 0 : i32
    %c0_i32_1 = arith.constant 0 : i32
    %c0_i32_2 = arith.constant 0 : i32
    return %c0_i32, %c0_i32_0, %c0_i32_1 : i32, i32, i32
  }
  func.func @transform_4(%arg0: i32) -> (i32, i32) {
    %c0_i32 = arith.constant 0 : i32
    %c0_i32_0 = arith.constant 0 : i32
    %c0_i32_1 = arith.constant 0 : i32
    return %c0_i32, %c0_i32_0 : i32, i32
  }
  func.func @transform_5(%arg0: i32) -> (i32, i32) {
    %c0_i32 = arith.constant 0 : i32
    %c0_i32_0 = arith.constant 0 : i32
    %c0_i32_1 = arith.constant 0 : i32
    return %c0_i32, %c0_i32_0 : i32, i32
  }
  func.func @transform_6(%arg0: i32) -> (i32, i32, i32) {
    %c0_i32 = arith.constant 0 : i32
    %c0_i32_0 = arith.constant 0 : i32
    %c0_i32_1 = arith.constant 0 : i32
    %c0_i32_2 = arith.constant 0 : i32
    return %c0_i32, %c0_i32_0, %c0_i32_1 : i32, i32, i32
  }
  func.func @transform_7(%arg0: i32) -> (i32, i32) {
    %c0_i32 = arith.constant 0 : i32
    %c0_i32_0 = arith.constant 0 : i32
    %c0_i32_1 = arith.constant 0 : i32
    return %c0_i32, %c0_i32_0 : i32, i32
  }
  func.func @transform_8(%arg0: i32) -> (i32, i32) {
    %c0_i32 = arith.constant 0 : i32
    %c0_i32_0 = arith.constant 0 : i32
    %c0_i32_1 = arith.constant 0 : i32
    return %c0_i32, %c0_i32_0 : i32, i32
  }
  func.func @transform_9(%arg0: i32) -> (i32, i32, i32) {
    %c0_i32 = arith.constant 0 : i32
    %c0_i32_0 = arith.constant 0 : i32
    %c0_i32_1 = arith.constant 0 : i32
    return %arg0, %c0_i32, %c0_i32_0 : i32, i32, i32
  }
}

</mosaic_0001>

<bundles_post_ra>
// kernel: tile.23
= control target key start
LH: loop header
LB: loop body
LE: loop exit
PB: predicated region body
PF: predicated region fallthrough
CT: control target
= control target key end

     0   :  { %s28_s0 = inlined_call_operand.vmem [shape: f32[4], index: 0, kind: input, shape index: {}]   ;;  %s29_s1 = inlined_call_operand.vmem [shape: f32[16,4], index: 1, kind: output, shape index: {}]  }
   0x1   :  { %v4_v0 = vld [vmem:[%s28_s0] ss:$0 sm:$0xff] }
   0x2   :  { %5 = vst [vmem:[%s29_s1] sm:$0xff] %v4_v0 }
   0x3   :  { %8 = vst [vmem:[%s29_s1 + $0x8] sm:$0xff] %v4_v0 }

// kernel: tile.24
= control target key start
LH: loop header
LB: loop body
LE: loop exit
PB: predicated region body
PF: predicated region fallthrough
CT: control target
= control target key end

     0   :  { %s131_s10 = smov 60   ;;  %s132_s11 = smov 52   ;;  %vm3_vm0 = vcmask 31744   ;;  %vm9_vm1 = vcmask 523744   ;;  %vm15_vm2 = vcmask 490944   ;;  %vm21_vm3 = vcmask 458144   ;;  %s207_s0 = inlined_call_operand.vmem [shape: f32[16,4], index: 0, kind: input, shape index: {}]   ;;  %s208_s1 = inlined_call_operand.vmem [shape: f32[1,64], index: 1, kind: output, shape index: {}]  }
   0x1   :  { %v101_v0 = vld [vmem:[%s207_s0 + $0xf] sm:$0x1]   ;;  %v103_v1 = vld [vmem:[%s207_s0 + $0xd] sm:$0x1]   ;;  %v105_v2 = vld [vmem:[%s207_s0 + $0xb] sm:$0x1]  }
   0x2   :  { %7 = vrot.lane.b32.xlu0 %v101_v0, %s131_s10  ;;  %19 = vrot.lane.b32.xlu1 %v103_v1, %s132_s11  ;;  %s133_s14 = smov 44   ;;  %v102_v3 = vld [vmem:[%s207_s0 + $0xe] sm:$0x1]   ;;  %v104_v4 = vld [vmem:[%s207_s0 + $0xc] sm:$0x1]   ;;  %s134_s19 = smov 56  }
   0x3   :  { %31 = vrot.lane.b32.xlu2 %v105_v2, %s133_s14  ;;  %s135_s20 = smov 48   ;;  %v106_v5 = vld [vmem:[%s207_s0 + $0xa] sm:$0x1]   ;;  %s136_s23 = smov 40   ;;  %v107_v6 = vld [vmem:[%s207_s0 + $0x9] sm:$0x1]  }
   0x4   :  { %v108_v7 = vld [vmem:[%s207_s0 + $0x8] sm:$0x1]   ;;  %s137_s28 = smov 36   ;;  %s138_s29 = smov 32   ;;  %v109_v8 = vld [vmem:[%s207_s0 + $0x7] sm:$0x1]  }
   0x5   :  { %s139_s3 = smov 28   ;;  %v110_v9 = vld [vmem:[%s207_s0 + $0x6] sm:$0x1]   ;;  %v111_v10 = vld [vmem:[%s207_s0 + $0x5] sm:$0x1]   ;;  %s140_s8 = smov 24  }
   0x6   :  { %s141_s9 = smov 20   ;;  %v112_v11 = vld [vmem:[%s207_s0 + $0x4] sm:$0x1]   ;;  %s142_s12 = smov 16   ;;  %v113_v12 = vld [vmem:[%s207_s0 + $0x3] sm:$0x1]  }
   0x7   :  { %v114_v13 = vld [vmem:[%s207_s0 + $0x2] sm:$0x1]   ;;  %s143_s17 = smov 12   ;;  %s144_s18 = smov 8   ;;  %v115_v14 = vld [vmem:[%s207_s0 + $0x1] sm:$0x1]  }
   0x8   :  { %s145_s21 = smov 4   ;;  %v2_v15 = vld [vmem:[%s207_s0] sm:$0x1]   ;;  %vm27_vm4 = vcmask 425344   ;;  %vm33_vm5 = vcmask 392544   ;;  %vm39_vm6 = vcmask 359744  }
   0x9   :  { %4 = vst.msk [vmem:[#allocation0] sm:$0x1] %vm3_vm0, %v2_v15   ;;  %vm45_vm7 = vcmask 326944   ;;  %vm51_vm8 = vcmask 294144   ;;  %vm57_vm9 = vcmask 261344   ;;  %vm63_vm10 = vcmask 228544  }
   0xa   :  { %13 = vrot.lane.b32.xlu0 %v102_v3, %s134_s19  ;;  %25 = vrot.lane.b32.xlu1 %v104_v4, %s135_s20  ;;  %vm69_vm11 = vcmask 195744   ;;  %vm75_vm12 = vcmask 162944   ;;  %vm81_vm13 = vcmask 130144   ;;  %vm87_vm14 = vcmask 97344  }
   0xb   :  { %37 = vrot.lane.b32.xlu2 %v106_v5, %s136_s23  ;;  %vm93_vm15 = vcmask 64544  }
  0x12   :  { %43 = vrot.lane.b32.xlu0 %v107_v6, %s137_s28  ;;  %49 = vrot.lane.b32.xlu1 %v108_v7, %s138_s29 }
  0x13   :  { %55 = vrot.lane.b32.xlu2 %v109_v8, %s139_s3 }
  0x1a   :  { %61 = vrot.lane.b32.xlu0 %v110_v9, %s140_s8  ;;  %67 = vrot.lane.b32.xlu1 %v111_v10, %s141_s9 }
  0x1b   :  { %73 = vrot.lane.b32.xlu2 %v112_v11, %s142_s12 }
  0x22   :  { %79 = vrot.lane.b32.xlu0 %v113_v12, %s143_s17  ;;  %85 = vrot.lane.b32.xlu1 %v114_v13, %s144_s18 }
  0x23   :  { %91 = vrot.lane.b32.xlu2 %v115_v14, %s145_s21 }
  0x5d   :  { %v32_v16 = vpop.permute.xlu2 %31  }
  0x65   :  { %v38_v17 = vpop.permute.xlu2 %37  }
  0x6d   :  { %v56_v18 = vpop.permute.xlu2 %55  }
  0x74   :  { %v8_v19 = vpop.permute.xlu0 %7   ;;  %v20_v20 = vpop.permute.xlu1 %19  }
  0x75   :  { %10 = vst.msk [vmem:[#allocation0] sm:$0x1] %vm9_vm1, %v8_v19   ;;  %v74_v21 = vpop.permute.xlu2 %73  }
  0x7c   :  { %v14_v22 = vpop.permute.xlu0 %13   ;;  %v26_v23 = vpop.permute.xlu1 %25  }
  0x7d   :  { %16 = vst.msk [vmem:[#allocation0] sm:$0x1] %vm15_vm2, %v14_v22   ;;  %v92_v24 = vpop.permute.xlu2 %91  }
  0x7e   :  { %22 = vst.msk [vmem:[#allocation0] sm:$0x1] %vm21_vm3, %v20_v20  }
  0x7f   :  { %28 = vst.msk [vmem:[#allocation0] sm:$0x1] %vm27_vm4, %v26_v23  }
  0x80   :  { %34 = vst.msk [vmem:[#allocation0] sm:$0x1] %vm33_vm5, %v32_v16  }
  0x81   :  { %40 = vst.msk [vmem:[#allocation0] sm:$0x1] %vm39_vm6, %v38_v17  }
  0x84   :  { %v44_v25 = vpop.permute.xlu0 %43   ;;  %v50_v26 = vpop.permute.xlu1 %49  }
  0x85   :  { %46 = vst.msk [vmem:[#allocation0] sm:$0x1] %vm45_vm7, %v44_v25  }
  0x86   :  { %52 = vst.msk [vmem:[#allocation0] sm:$0x1] %vm51_vm8, %v50_v26  }
  0x87   :  { %58 = vst.msk [vmem:[#allocation0] sm:$0x1] %vm57_vm9, %v56_v18  }
  0x8c   :  { %v62_v27 = vpop.permute.xlu0 %61   ;;  %v68_v28 = vpop.permute.xlu1 %67  }
  0x8d   :  { %64 = vst.msk [vmem:[#allocation0] sm:$0x1] %vm63_vm10, %v62_v27  }
  0x8e   :  { %70 = vst.msk [vmem:[#allocation0] sm:$0x1] %vm69_vm11, %v68_v28  }
  0x8f   :  { %76 = vst.msk [vmem:[#allocation0] sm:$0x1] %vm75_vm12, %v74_v21  }
  0x94   :  { %v80_v29 = vpop.permute.xlu0 %79   ;;  %v86_v30 = vpop.permute.xlu1 %85  }
  0x95   :  { %82 = vst.msk [vmem:[#allocation0] sm:$0x1] %vm81_vm13, %v80_v29  }
  0x96   :  { %88 = vst.msk [vmem:[#allocation0] sm:$0x1] %vm87_vm14, %v86_v30  }
  0x97   :  { %94 = vst.msk [vmem:[#allocation0] sm:$0x1] %vm93_vm15, %v92_v24  }
  0x9e   :  { %v97_v31 = vld [vmem:[#allocation0] sm:$0x1] }
  0x9f   :  { %100 = vst [vmem:[%s208_s1] sm:$0x1] %v97_v31 }

// kernel: up_forward.1
= control target key start
LH: loop header
LB: loop body
LE: loop exit
PB: predicated region body
PF: predicated region fallthrough
CT: control target
= control target key end

     0   :  { %s993_s30 = smov 0   ;;  %s1307_s0 = inlined_call_operand.vmem [shape: f32[2,18,72], index: 0, kind: input, shape index: {}]   ;;  %s1308_s1 = inlined_call_operand.vmem [shape: f32[2,18,72], index: 1, kind: input, shape index: {}]   ;;  %s1309_s2 = inlined_call_operand.vmem [shape: f32[3,72,64], index: 2, kind: input, shape index: {}]   ;;  %s1310_s3 = inlined_call_operand.vmem [shape: f32[3,72,64], index: 3, kind: input, shape index: {}]   ;;  %s1311_s4 = inlined_call_operand.vmem [shape: f32[1,64], index: 4, kind: input, shape index: {}]   ;;  %s1312_s5 = inlined_call_operand.vmem [shape: f32[1,64], index: 5, kind: input, shape index: {}]   ;;  %s1313_s6 = inlined_call_operand.vmem [shape: f32[3,64,64], index: 6, kind: input, shape index: {}]   ;;  %s1314_s7 = inlined_call_operand.vmem [shape: f32[1,64], index: 7, kind: input, shape index: {}]   ;;  %s1315_s8 = inlined_call_operand.vmem [shape: f32[1,64], index: 8, kind: input, shape index: {}]   ;;  %s1316_s9 = inlined_call_operand.vmem [shape: f32[2,16,64], index: 9, kind: output, shape index: {}]  }
   0x1 LB: > { %s830_s10 = sadd.s32 4294967295, %s940_s30   ;;  %p834_p0 = scmp.ge.s32.totalorder %s940_s30, 1  ;;  %s940_s30 = sphi %s993_s30, %s19_s30  }
   0x2   : > { %p297_p1 = scmp.lt.s32.totalorder %s940_s30, 3 }
   0x4   : > { %p298_p2 = pnand %p834_p0, %p297_p1 }
   0x5   : > { %p1010_p3 = scmp.lt.s32.totalorder (!%p298_p2), %s830_s10, 1 }
   0x6   : > { %301 = sbr.rel (%p298_p2) target bundleno = 350 (0x15e), region = 56 }
   0xb   : > { %v374_v0 = vld [vmem:[%s1310_s3 + $0x40] sm:$0xff]  ;;  %v851_v1 = vld [vmem:[%s1309_s2 + $0x88] sm:$0xff]  ;;  %v373_v3 = vld [vmem:[%s1310_s3 + $0x38] sm:$0xff]  ;;  %s1319_s10 = smov (!%p1010_p3, %s830_s10), 1  ;;  %vm375_vm0 = vcmask 588800   ;;  %vm620_vm1 = vcmask 516096  }
   0xc   : > { %v363_v2 = vld [vmem:[%s1309_s2 + $0x40] sm:$0xff]  ;;  %389 = vmatpush.msra.mxu0 %v374_v0  ;;  %459 = vmatpush.msra.mxu2 %v851_v1  ;;  %v862_v5 = vld [vmem:[%s1310_s3 + $0x88] sm:$0xff]  ;;  %v362_v6 = vld [vmem:[%s1309_s2 + $0x38] sm:$0xff]  ;;  %s920_s19 = smul.u32 24, %s1319_s10  ;;  %vm623_vm2 = vcmask 523264   ;;  %s911_s16 = sshll.u32 %s1319_s10, 4 }
   0xd   : > { %v850_v4 = vld [vmem:[%s1309_s2 + $0x80] sm:$0xff]  ;;  %418 = vmatpush.msra.mxu1 %v363_v2  ;;  %502 = vmatpush.msra.mxu3 %v862_v5  ;;  %v372_v7 = vld [vmem:[%s1310_s3 + $0x30] sm:$0xff]  ;;  %v849_v8 = vld [vmem:[%s1309_s2 + $0x78] sm:$0xff]  ;;  %s352_s22 = scalar_lea.vmem %s1316_s9, %s911_s16 }
   0xe   : > { %390 = vmatpush.msra.mxu0 %v373_v3  ;;  %460 = vmatpush.msra.mxu2 %v850_v4  ;;  %v861_v9 = vld [vmem:[%s1310_s3 + $0x80] sm:$0xff]  ;;  %v361_v10 = vld [vmem:[%s1309_s2 + $0x30] sm:$0xff]  ;;  %v371_v11 = vld [vmem:[%s1310_s3 + $0x28] sm:$0xff]  ;;  %s1103_s20 = scalar_lea.vmem %s1307_s0, %s920_s19  ;;  %s1120_s11 = scalar_lea.vmem %s1308_s1, %s920_s19 }
   0xf   : > { %419 = vmatpush.msra.mxu1 %v362_v6  ;;  %503 = vmatpush.msra.mxu3 %v861_v9  ;;  %v848_v12 = vld [vmem:[%s1309_s2 + $0x70] sm:$0xff]  ;;  %v860_v13 = vld [vmem:[%s1310_s3 + $0x78] sm:$0xff]  ;;  %v360_v14 = vld [vmem:[%s1309_s2 + $0x28] sm:$0xff] }
  0x10   : > { %391 = vmatpush.msra.mxu0 %v372_v7  ;;  %461 = vmatpush.msra.mxu2 %v849_v8  ;;  %v859_v15 = vld [vmem:[%s1310_s3 + $0x70] sm:$0xff]  ;;  %v370_v16 = vld [vmem:[%s1310_s3 + $0x20] sm:$0xff]  ;;  %v847_v17 = vld [vmem:[%s1309_s2 + $0x68] sm:$0xff] }
  0x11   : > { %420 = vmatpush.msra.mxu1 %v361_v10  ;;  %504 = vmatpush.msra.mxu3 %v860_v13  ;;  %v359_v18 = vld [vmem:[%s1309_s2 + $0x20] sm:$0xff]  ;;  %v858_v19 = vld [vmem:[%s1310_s3 + $0x68] sm:$0xff]  ;;  %v369_v20 = vld [vmem:[%s1310_s3 + $0x18] sm:$0xff] }
  0x12   : > { %392 = vmatpush.msra.mxu0 %v371_v11  ;;  %462 = vmatpush.msra.mxu2 %v848_v12  ;;  %v846_v21 = vld [vmem:[%s1309_s2 + $0x60] sm:$0xff]  ;;  %v358_v22 = vld [vmem:[%s1309_s2 + $0x18] sm:$0xff]  ;;  %v368_v24 = vld [vmem:[%s1310_s3 + $0x10] sm:$0xff]  ;;  %v942_v12 = vmov 0.0  }
  0x13   : > { %421 = vmatpush.msra.mxu1 %v360_v14  ;;  %505 = vmatpush.msra.mxu3 %v859_v15  ;;  %v857_v23 = vld [vmem:[%s1310_s3 + $0x60] sm:$0xff]  ;;  %v845_v25 = vld [vmem:[%s1309_s2 + $0x58] sm:$0xff]  ;;  %v357_v26 = vld [vmem:[%s1309_s2 + $0x10] sm:$0xff]  ;;  %621 = vst.msk [vmem:[#allocation2] sm:$0x1] %vm620_vm1, %v942_v12 }
  0x14   : > { %393 = vmatpush.msra.mxu0 %v370_v16  ;;  %463 = vmatpush.msra.mxu2 %v847_v17  ;;  %v856_v27 = vld [vmem:[%s1310_s3 + $0x58] sm:$0xff]  ;;  %v367_v28 = vld [vmem:[%s1310_s3 + $0x8] sm:$0xff]  ;;  %v844_v29 = vld [vmem:[%s1309_s2 + $0x50] sm:$0xff]  ;;  %622 = vst.msk [vmem:[#allocation2 + $0x11] sm:$0x1] %vm620_vm1, %v942_v12 }
  0x15   : > { %422 = vmatpush.msra.mxu1 %v359_v18  ;;  %506 = vmatpush.msra.mxu3 %v858_v19  ;;  %v356_v30 = vld [vmem:[%s1309_s2 + $0x8] sm:$0xff]  ;;  %v855_v31 = vld [vmem:[%s1310_s3 + $0x50] sm:$0xff]  ;;  %v366_v32 = vld [vmem:[%s1310_s3] sm:$0xff] }
  0x16   : > { %394 = vmatpush.msra.mxu0 %v369_v20  ;;  %464 = vmatpush.msra.mxu2 %v846_v21  ;;  %v843_v33 = vld [vmem:[%s1309_s2 + $0x48] sm:$0xff]  ;;  %v355_v34 = vld [vmem:[%s1309_s2] sm:$0xff]  ;;  %v873_v36 = vld [vmem:[%s1309_s2 + $0xd0] sm:$0xff] }
  0x17   : > { %423 = vmatpush.msra.mxu1 %v358_v22  ;;  %507 = vmatpush.msra.mxu3 %v857_v23  ;;  %v434_v35 = vld [vmem:[%s1103_s20 + $0x1] sm:$0xff]  ;;  %v884_v42 = vld [vmem:[%s1310_s3 + $0xd0] sm:$0xff]  ;;  %v870_v45 = vld [vmem:[%s1309_s2 + $0xb8] sm:$0xff] }
  0x18   : > { %395 = vmatpush.msra.mxu0 %v368_v24  ;;  %465 = vmatpush.msra.mxu2 %v845_v25  ;;  %v353_v37 = vld [vmem:[%s1103_s20] sm:$0xff]  ;;  %v854_v39 = vld [vmem:[%s1310_s3 + $0x48] sm:$0xff]  ;;  %v869_v48 = vld [vmem:[%s1309_s2 + $0xb0] sm:$0xff] }
  0x19   : > { %424 = vmatpush.msra.mxu1 %v357_v26  ;;  %508 = vmatpush.msra.mxu3 %v856_v27  ;;  %v364_v38 = vld [vmem:[%s1120_s11] sm:$0xff]  ;;  %v872_v41 = vld [vmem:[%s1309_s2 + $0xc8] sm:$0xff]  ;;  %v881_v50 = vld [vmem:[%s1310_s3 + $0xb8] sm:$0xff] }
  0x1a   : > { %396 = vmatpush.msra.mxu0 %v367_v28  ;;  %466 = vmatpush.msra.mxu2 %v844_v29  ;;  %v477_v40 = vld [vmem:[%s1120_s11 + $0x1] sm:$0xff]  ;;  %v435_v47 = vld [vmem:[%s1103_s20 + $0x9] sm:$0xff]  ;;  %v866_v57 = vld [vmem:[%s1309_s2 + $0x98] sm:$0xff] }
  0x1b   : > { %425 = vmatpush.msra.mxu1 %v356_v30  ;;  %509 = vmatpush.msra.mxu3 %v855_v31  ;;  %v871_v43 = vld [vmem:[%s1309_s2 + $0xc0] sm:$0xff]  ;;  %v883_v44 = vld [vmem:[%s1310_s3 + $0xc8] sm:$0xff]  ;;  %v880_v54 = vld [vmem:[%s1310_s3 + $0xb0] sm:$0xff] }
  0x1c   : > { %397 = vmatpush.msra.mxu0 %v366_v32  ;;  %467 = vmatpush.msra.mxu2 %v843_v33  ;;  %v882_v46 = vld [vmem:[%s1310_s3 + $0xc0] sm:$0xff]  ;;  %v354_v49 = vld [vmem:[%s1103_s20 + $0x8] sm:$0xff]  ;;  %v865_v59 = vld [vmem:[%s1309_s2 + $0x90] sm:$0xff] }
  0x1d   : > { %426 = vmatpush.msra.mxu1 %v355_v34  ;;  %852 = vmatmul.msk.f32.vlgmr.msra.gmra.mxu2 %vm375_vm0, %v434_v35  ;;  %v365_v51 = vld [vmem:[%s1120_s11 + $0x8] sm:$0xff]  ;;  %v867_v55 = vld [vmem:[%s1309_s2 + $0xa0] sm:$0xff]  ;;  %v877_v60 = vld [vmem:[%s1310_s3 + $0x98] sm:$0xff] }
  0x1e   : > { %545 = vmatpush.msrb.mxu0 %v873_v36  ;;  %841 = vmatmul.msk.f32.vlgmr.msra.gmra.mxu1 %vm375_vm0, %v353_v37  ;;  %v478_v52 = vld [vmem:[%s1120_s11 + $0x9] sm:$0xff]  ;;  %v878_v58 = vld [vmem:[%s1310_s3 + $0xa0] sm:$0xff]  ;;  %v894_v2 = vld [vmem:[%s1313_s6 + $0x78] sm:$0xff] }
  0x1f   : > { %839 = vmatmul.msk.f32.vlgmr.msra.gmra.mxu0 %vm375_vm0, %v364_v38  ;;  %510 = vmatpush.msra.mxu3 %v854_v39  ;;  %v868_v53 = vld [vmem:[%s1309_s2 + $0xa8] sm:$0xff]  ;;  %v876_v62 = vld [vmem:[%s1310_s3 + $0x90] sm:$0xff]  ;;  %v635_v3 = vld [vmem:[%s1313_s6 + $0x38] sm:$0xff] }
  0x20   : > { %863 = vmatmul.msk.f32.vlgmr.msra.gmra.mxu3 %vm375_vm0, %v477_v40  ;;  %546 = vmatpush.msrb.mxu0 %v872_v41  ;;  %v879_v56 = vld [vmem:[%s1310_s3 + $0xa8] sm:$0xff]  ;;  %v893_v4 = vld [vmem:[%s1313_s6 + $0x70] sm:$0xff]  ;;  %v891_v8 = vld [vmem:[%s1313_s6 + $0x60] sm:$0xff] }
  0x21   : > { %588 = vmatpush.msrb.mxu1 %v884_v42  ;;  %v520_v61 = vld [vmem:[%s1103_s20 + $0x2] sm:$0xff]  ;;  %v521_v0 = vld [vmem:[%s1103_s20 + $0xa] sm:$0xff]  ;;  %661 = vmatpush.msrb.mxu2 %v894_v2  ;;  %v890_v10 = vld [vmem:[%s1313_s6 + $0x58] sm:$0xff] }
  0x22   : > { %547 = vmatpush.msrb.mxu0 %v871_v43  ;;  %v563_v63 = vld [vmem:[%s1120_s11 + $0x2] sm:$0xff]  ;;  %v564_v1 = vld [vmem:[%s1120_s11 + $0xa] sm:$0xff]  ;;  %690 = vmatpush.msrb.mxu3 %v635_v3  ;;  %v631_v11 = vld [vmem:[%s1313_s6 + $0x18] sm:$0xff] }
  0x23   : > { %589 = vmatpush.msrb.mxu1 %v883_v44  ;;  %v634_v5 = vld [vmem:[%s1313_s6 + $0x30] sm:$0xff]  ;;  %662 = vmatpush.msrb.mxu2 %v893_v4  ;;  %v892_v6 = vld [vmem:[%s1313_s6 + $0x68] sm:$0xff]  ;;  %v632_v9 = vld [vmem:[%s1313_s6 + $0x20] sm:$0xff] }
  0x24   : > { %548 = vmatpush.msrb.mxu0 %v870_v45  ;;  %691 = vmatpush.msrb.mxu3 %v634_v5  ;;  %v633_v7 = vld [vmem:[%s1313_s6 + $0x28] sm:$0xff]  ;;  %v889_v13 = vld [vmem:[%s1313_s6 + $0x50] sm:$0xff]  ;;  %v887_v19 = vld [vmem:[%s1313_s6 + $0x40] sm:$0xff] }
  0x25   : > { %590 = vmatpush.msrb.mxu1 %v882_v46  ;;  %853 = vmatmul.msk.f32.gmra.mxu2 %vm375_vm0, %v435_v47  ;;  %v630_v14 = vld [vmem:[%s1313_s6 + $0x10] sm:$0xff]  ;;  %v888_v16 = vld [vmem:[%s1313_s6 + $0x48] sm:$0xff]  ;;  %v628_v20 = vld [vmem:[%s1313_s6] sm:$0xff] }
  0x26   : > { %549 = vmatpush.msrb.mxu0 %v869_v48  ;;  %842 = vmatmul.msk.f32.gmra.mxu1 %vm375_vm0, %v354_v49  ;;  %v629_v17 = vld [vmem:[%s1313_s6 + $0x8] sm:$0xff]  ;;  %v906_v21 = vld [vmem:[%s1313_s6 + $0xb8] sm:$0xff]  ;;  %v905_v22 = vld [vmem:[%s1313_s6 + $0xb0] sm:$0xff] }
  0x27   : > { %591 = vmatpush.msrb.mxu1 %v881_v50  ;;  %840 = vmatmul.msk.f32.gmra.mxu0 %vm375_vm0, %v365_v51  ;;  %v904_v24 = vld [vmem:[%s1313_s6 + $0xa8] sm:$0xff]  ;;  %v903_v26 = vld [vmem:[%s1313_s6 + $0xa0] sm:$0xff]  ;;  %v902_v31 = vld [vmem:[%s1313_s6 + $0x98] sm:$0xff] }
  0x28   : > { %864 = vmatmul.msk.f32.gmra.mxu3 %vm375_vm0, %v478_v52  ;;  %550 = vmatpush.msrb.mxu0 %v868_v53  ;;  %v901_v32 = vld [vmem:[%s1313_s6 + $0x90] sm:$0xff]  ;;  %v900_v33 = vld [vmem:[%s1313_s6 + $0x88] sm:$0xff]  ;;  %v899_v37 = vld [vmem:[%s1313_s6 + $0x80] sm:$0xff] }
  0x29   : > { %592 = vmatpush.msrb.mxu1 %v880_v54  ;;  %663 = vmatpush.msrb.mxu2 %v892_v6  ;;  %v930_v40 = vld [vmem:[%s1311_s4] ss:$0 sm:$0xff] }
  0x2a   : > { %551 = vmatpush.msrb.mxu0 %v867_v55  ;;  %692 = vmatpush.msrb.mxu3 %v633_v7  ;;  %v931_v45 = vld [vmem:[%s1312_s5] ss:$0 sm:$0xff] }
  0x2b   : > { %593 = vmatpush.msrb.mxu1 %v879_v56  ;;  %664 = vmatpush.msrb.mxu2 %v891_v8  ;;  %v932_v5 = vld [vmem:[%s1314_s7] ss:$0 sm:$0xff] }
  0x2c   : > { %552 = vmatpush.msrb.mxu0 %v866_v57  ;;  %693 = vmatpush.msrb.mxu3 %v632_v9  ;;  %v933_v9 = vld [vmem:[%s1315_s8] ss:$0 sm:$0xff] }
  0x2d   : > { %594 = vmatpush.msrb.mxu1 %v878_v58  ;;  %665 = vmatpush.msrb.mxu2 %v890_v10 }
  0x2e   : > { %553 = vmatpush.msrb.mxu0 %v865_v59  ;;  %694 = vmatpush.msrb.mxu3 %v631_v11 }
  0x2f   : > { %595 = vmatpush.msrb.mxu1 %v877_v60  ;;  %874 = vmatmul.msk.f32.vlgmr.msrb.gmra.mxu0 %vm375_vm0, %v520_v61 }
  0x30   : > { %666 = vmatpush.msrb.mxu2 %v889_v13  ;;  %695 = vmatpush.msrb.mxu3 %v630_v14 }
  0x31   : > { %596 = vmatpush.msrb.mxu1 %v876_v62 }
  0x32   : > { %885 = vmatmul.msk.f32.vlgmr.msrb.gmra.mxu1 %vm375_vm0, %v563_v63  ;;  %667 = vmatpush.msrb.mxu2 %v888_v16 }
  0x33   : > { %696 = vmatpush.msrb.mxu3 %v629_v17 }
  0x34   : > { %668 = vmatpush.msrb.mxu2 %v887_v19 }
  0x35   : > { %697 = vmatpush.msrb.mxu3 %v628_v20 }
  0x36   : > { %730 = vmatpush.msra.mxu2 %v906_v21 }
  0x37   : > { %875 = vmatmul.msk.f32.gmra.mxu0 %vm375_vm0, %v521_v0  ;;  %912 = vmatpush.msra.mxu3 %v906_v21 }
  0x38   : > { %731 = vmatpush.msra.mxu2 %v905_v22 }
  0x39   : > { %913 = vmatpush.msra.mxu3 %v905_v22 }
  0x3a   : > { %886 = vmatmul.msk.f32.gmra.mxu1 %vm375_vm0, %v564_v1  ;;  %732 = vmatpush.msra.mxu2 %v904_v24 }
  0x3b   : > { %914 = vmatpush.msra.mxu3 %v904_v24 }
  0x3c   : > { %733 = vmatpush.msra.mxu2 %v903_v26 }
  0x3d   : > { %915 = vmatpush.msra.mxu3 %v903_v26 }
  0x3e   : > { %734 = vmatpush.msra.mxu2 %v902_v31 }
  0x3f   : > { %916 = vmatpush.msra.mxu3 %v902_v31 }
  0x40   : > { %735 = vmatpush.msra.mxu2 %v901_v32 }
  0x41   : > { %917 = vmatpush.msra.mxu3 %v901_v32 }
  0x42   : > { %736 = vmatpush.msra.mxu2 %v900_v33 }
  0x43   : > { %918 = vmatpush.msra.mxu3 %v900_v33 }
  0x44   : > { %737 = vmatpush.msra.mxu2 %v899_v37 }
  0x45   : > { %919 = vmatpush.msra.mxu3 %v899_v37 }
  0x9b   : > { %v428_v18 = vpop.f32.mrf.mxu1 }
  0x9c   : > { %v399_v15 = vpop.f32.mrf.mxu0 }
  0x9d   : > { %v429_v27 = vadd.f32 %v428_v18, %v399_v15 }
  0xa0   : > { %v469_v23 = vpop.f32.mrf.mxu2 }
  0xa1   : > { %v475_v29 = vadd.f32 %v469_v23, %v429_v27 }
  0xa3   : > { %v512_v28 = vpop.f32.mrf.mxu3  ;;  %v431_v30 = vpop.f32.mrf.mxu1 }
  0xa4   : > { %v402_v25 = vpop.f32.mrf.mxu0  ;;  %v518_v34 = vadd.f32 %v512_v28, %v475_v29 }
  0xa5   : > { %v432_v38 = vadd.f32 %v431_v30, %v402_v25 }
  0xa8   : > { %v472_v35 = vpop.f32.mrf.mxu2 }
  0xa9   : > { %v476_v41 = vadd.f32 %v472_v35, %v432_v38 }
  0xab   : > { %v515_v43 = vpop.f32.mrf.mxu3 }
  0xac   : > { %v555_v36 = vpop.f32.mrf.mxu0  ;;  %v519_v47 = vadd.f32 %v515_v43, %v476_v41 }
  0xad   : > { %v561_v39 = vadd.f32 %v555_v36, %v518_v34 }
  0xaf   : > { %v598_v42 = vpop.f32.mrf.mxu1 }
  0xb0   : > { %v604_v44 = vadd.f32 %v598_v42, %v561_v39 }
  0xb2   : > { %v610_v46 = vmul.f32 %v930_v40, %v604_v44 }
  0xb4   : > { %v616_v48 = vadd.f32 %v931_v45, %v610_v46  ;;  %v558_v49 = vpop.f32.mrf.mxu0 }
  0xb5   : > { %v562_v50 = vadd.f32 %v558_v49, %v519_v47 }
  0xb6   : > { %v618_v51 = vmax.f32 %v616_v48, 0.0 }
  0xb7   : > { %v601_v52 = vpop.f32.mrf.mxu1 }
  0xb8   : > { %624 = vst.msk [vmem:[#allocation2 + $0x1] sm:$0xff] %vm623_vm2, %v618_v51  ;;  %v605_v53 = vadd.f32 %v601_v52, %v562_v50 }
  0xba   : > { %v611_v54 = vmul.f32 %v930_v40, %v605_v53 }
  0xbc   : > { %v617_v55 = vadd.f32 %v931_v45, %v611_v54 }
  0xbe   : > { %v619_v56 = vmax.f32 %v617_v55, 0.0 }
  0xbf   : > { %v636_v57 = vld [vmem:[#allocation2 + $0x1] sm:$0xff] }
  0xc0   : > { %v626_v58 = vld [vmem:[#allocation2] sm:$0xff]  ;;  %625 = vst.msk [vmem:[#allocation2 + $0x9] sm:$0xff] %vm623_vm2, %v619_v56  ;;  %895 = vmatmul.msk.f32.vlgmr.msrb.gmra.mxu2 %vm623_vm2, %v636_v57 }
  0xc1   : > { %897 = vmatmul.msk.f32.vlgmr.msrb.gmra.mxu3 %vm623_vm2, %v626_v58 }
  0xc7   : > { %v637_v59 = vld [vmem:[#allocation2 + $0x9] sm:$0xff] }
  0xc8   : > { %v627_v60 = vld [vmem:[#allocation2 + $0x8] sm:$0xff]  ;;  %896 = vmatmul.msk.f32.gmra.mxu2 %vm623_vm2, %v637_v59 }
  0xc9   : > { %898 = vmatmul.msk.f32.gmra.mxu3 %vm623_vm2, %v627_v60  ;;  %v705_v61 = vld [vmem:[#allocation2 + $0x2] sm:$0xff]  ;;  %v706_v62 = vld [vmem:[#allocation2 + $0xa] sm:$0xff] }
  0xd0   : > { %907 = vmatmul.msk.f32.vlgmr.msra.gmra.mxu2 %vm623_vm2, %v705_v61 }
  0xd1   : > { %908 = vmatmul.msk.f32.vlgmr.msra.gmra.mxu3 %vm623_vm2, %v706_v62 }
 0x143   : > { %v670_v63 = vpop.f32.mrf.mxu2 }
 0x144   : > { %v699_v0 = vpop.f32.mrf.mxu3 }
 0x145   : > { %v700_v3 = vadd.f32 %v699_v0, %v670_v63 }
 0x14b   : > { %v673_v1 = vpop.f32.mrf.mxu2 }
 0x14c   : > { %v702_v2 = vpop.f32.mrf.mxu3 }
 0x14d   : > { %v703_v4 = vadd.f32 %v702_v2, %v673_v1 }
 0x153   : > { %v739_v6 = vpop.f32.mrf.mxu2 }
 0x154   : > { %v742_v7 = vpop.f32.mrf.mxu3  ;;  %v745_v8 = vadd.f32 %v739_v6, %v700_v3 }
 0x155   : > { %v746_v10 = vadd.f32 %v742_v7, %v703_v4 }
 0x156   : > { %v751_v11 = vmul.f32 %v932_v5, %v745_v8 }
 0x157   : > { %v752_v12 = vmul.f32 %v932_v5, %v746_v10 }
 0x158   : > { %v757_v13 = vadd.f32 %v933_v9, %v751_v11 }
 0x159   : > { %v758_v14 = vadd.f32 %v933_v9, %v752_v12 }
 0x15a   : > { %v759_v15 = vmax.f32 %v757_v13, 0.0 }
 0x15b   : > { %v760_v16 = vmax.f32 %v758_v14, 0.0 }
 0x15c   : > { %761 = vst.msk [vmem:[%s352_s22] sm:$0xff] %vm623_vm2, %v759_v15 }
 0x15d   : > { %762 = vst.msk [vmem:[%s352_s22 + $0x8] sm:$0xff] %vm623_vm2, %v760_v16 }
 0x15e PF: > { %s19_s30 = sadd.s32 1, %s940_s30  }
 0x15f   : > { %p16_p4 = scmp.ge.s32.totalorder %s19_s30, 4  }
 0x161   :  { %18 = sbr.rel (!%p16_p4) target bundleno = 1 (0x1), region = 95 }

</bundles_post_ra>
